<compile_context>
chip_gen: v7x
topology: tpu7x:2x2x1
jax: 0.10.0
libtpu: 0.0.40
codegen_flags: <defaults>
</compile_context>

<pallas_src>
import jax
import jax.numpy as jnp
from jax.experimental import pallas as pl
from jax.experimental.pallas import tpu as pltpu


_LANE = 128
_SUBLANE = 8


def _controller_kernel(y_ref, u_ref):
    # Elementwise on the VPU:  u = y*(0.5 - y) - 1  ==  -y^2 - 1 + 0.5*y
    y = y_ref[...]
    half = jnp.asarray(0.5, y.dtype)
    one = jnp.asarray(1.0, y.dtype)
    u_ref[...] = y * (half - y) - one


def nonlinear_controller(y):
    """y: (batch, 1, K) -> u: (batch, 1, K), matching the PyTorch module.

    NOTE: for the tiny (2, 1, 32) benchmark shape a standalone Pallas call is
    pure launch overhead and plain fused XLA (`-y**2 - 1 + 0.5*y`) is faster;
    the kernel path below is what you want once this runs over real batch
    sizes / many fused controller steps.
    """
    orig_shape = y.shape
    n = y.size

    # ---- pick a lane-dense tiling ------------------------------------------
    # lane width: multiple of 128; go wide for non-toy sizes
    lane_width = 1024 if n >= 8 * 1024 else _LANE
    rows_needed = -(-n // lane_width)                       # ceil div
    # block rows: multiple of 8, capped at 256  ->  tile <= 1 MiB f32, so the
    # double-buffered in+out footprint (~4 MiB) fits under v5e's 16 MiB scoped
    # VMEM default and v7x's 32 MiB, no vmem_limit override needed.
    block_rows = min(256, -(-rows_needed // _SUBLANE) * _SUBLANE)
    padded_rows = -(-rows_needed // block_rows) * block_rows
    n_padded = padded_rows * lane_width

    flat = y.reshape(-1)
    if n_padded != n:
        flat = jnp.pad(flat, (0, n_padded - n))
    y2d = flat.reshape(padded_rows, lane_width)

    grid = (padded_rows // block_rows,)

    u2d = pl.pallas_call(
        _controller_kernel,
        out_shape=jax.ShapeDtypeStruct((padded_rows, lane_width), y.dtype),
        grid=grid,
        in_specs=[pl.BlockSpec((block_rows, lane_width), lambda i: (i, 0))],
        out_specs=pl.BlockSpec((block_rows, lane_width), lambda i: (i, 0)),
        compiler_params=pltpu.CompilerParams(
            dimension_semantics=("parallel",),
        ),
    )(y2d)

    # drop the pad region before restoring the original (batch, 1, K) shape
    return u2d.reshape(-1)[:n].reshape(orig_shape)


if __name__ == "__main__":
    # NonLinearController(input_K_dim=32, output_K_dim=32) -- no params,
    # output shape equals input shape (elementwise map).
    batch, input_K_dim = 2, 32
    key = jax.random.PRNGKey(0)
    y = jax.random.normal(key, (batch, 1, input_K_dim), dtype=jnp.float32)

    u = nonlinear_controller(y)
    u = jax.block_until_ready(u)

    # correctness check against plain-JAX reference of the PyTorch math
    u_ref = -y ** 2 - 1.0 + 0.5 * y
    assert u.shape == (batch, 1, input_K_dim)
    assert jnp.allclose(u, u_ref, atol=1e-6, rtol=1e-6)

    # also exercise the lane-dense tiled path on a non-toy, non-aligned size
    y_big = jax.random.normal(jax.random.PRNGKey(1), (8, 1, 5000), dtype=jnp.float32)
    u_big = jax.block_until_ready(nonlinear_controller(y_big))
    u_big_ref = -y_big ** 2 - 1.0 + 0.5 * y_big
    assert u_big.shape == y_big.shape
    assert jnp.allclose(u_big, u_big_ref, atol=1e-6, rtol=1e-6)

    print("KERNEL_OK")
</pallas_src>

<mosaic_0001>
module attributes {stable_mosaic.version = 11 : i64} {
  func.func @_controller_kernel(%arg0: i32, %arg1: memref<8x128xf32, #tpu.memory_space<vmem>>, %arg2: memref<8x128xf32, #tpu.memory_space<vmem>>) attributes {dimension_semantics = [#tpu.dimension_semantics<parallel>], iteration_bounds = array<i64: 1>, scalar_prefetch = 0 : i64, scratch_operands = 0 : i64, tpu.core_type = #tpu.core_type<tc>, window_params = [{transform_indices = @transform_0, window_bounds = array<i64: 8, 128>}, {transform_indices = @transform_1, window_bounds = array<i64: 8, 128>}]} {
    %c0 = arith.constant 0 : index
    %c0_0 = arith.constant 0 : index
    %0 = vector.load %arg1[%c0, %c0_0] : memref<8x128xf32, #tpu.memory_space<vmem>>, vector<8x128xf32>
    %cst = arith.constant 5.000000e-01 : f32
    %1 = vector.broadcast %cst : f32 to vector<8x128xf32>
    %2 = arith.subf %1, %0 : vector<8x128xf32>
    %3 = arith.mulf %0, %2 : vector<8x128xf32>
    %cst_1 = arith.constant 1.000000e+00 : f32
    %4 = vector.broadcast %cst_1 : f32 to vector<8x128xf32>
    %5 = arith.subf %3, %4 : vector<8x128xf32>
    %c0_2 = arith.constant 0 : index
    %c0_3 = arith.constant 0 : index
    %6 = vector.load %arg2[%c0_2, %c0_3] : memref<8x128xf32, #tpu.memory_space<vmem>>, vector<8x128xf32>
    tpu.vector_store %arg2[%c0_2, %c0_3], %5 {strides = array<i32>} : memref<8x128xf32, #tpu.memory_space<vmem>>, vector<8x128xf32>,
    return
  }
  func.func @transform_0(%arg0: i32) -> (i32, i32) {
    %c0_i32 = arith.constant 0 : i32
    %c0_i32_0 = arith.constant 0 : i32
    return %arg0, %c0_i32 : i32, i32
  }
  func.func @transform_1(%arg0: i32) -> (i32, i32) {
    %c0_i32 = arith.constant 0 : i32
    %c0_i32_0 = arith.constant 0 : i32
    return %arg0, %c0_i32 : i32, i32
  }
}

</mosaic_0001>

<bundles_post_ra>
// kernel: tpu_custom_call.1
= control target key start
LH: loop header
LB: loop body
LE: loop exit
PB: predicated region body
PF: predicated region fallthrough
CT: control target
= control target key end

     0   :  { %6 = vsyncpa [#allocation3], 0  ;;  %s128_s0 = inlined_call_operand.hbm [shape: f32[8,128], index: 0, kind: input, shape index: {}]   ;;  %s129_s1 = inlined_call_operand.hbm [shape: f32[8,128], index: 1, kind: output, shape index: {}]  }
   0x1   :  { %7 = vsyncpa [#allocation4], 0  ;;  %s92_s6 = smov [#allocation2]   ;;  %s44_s10 = scalar_lea.hbm %s128_s0, 128 }
   0x2   :  { %s14_s7 = sshll.u32 %s92_s6, 4  ;;  %p45_p0 = scmp.ne.s32.totalorder %s128_s0, %s44_s10  ;;  %s15_s7 = int_to_ptr.vmem [resolvable:$true] %s14_s7 }
   0x3   :  { %p48_p1 = scmp.lt.u32.totalorder %s44_s10, %s128_s0 }
   0x5   :  { %p50_p2 = pnand %p48_p1, %p45_p0 }
   0x7   :  { %53 = shalt.err (!%p50_p2)
}
   0x8   :  { %s54_s15 = scalar_lea.vmem %s15_s7, 128  ;;  %p59_p4 = scmp.lt.s32.totalorder %s15_s7, %s15_s7 }
   0x9   :  { %p55_p3 = scmp.ne.s32.totalorder %s15_s7, %s54_s15  ;;  %p60_p5 = scmp.lt.s32.totalorder %s54_s15, %s54_s15 }
   0xb   :  { %p61_p6 = por %p60_p5, %p59_p4 }
   0xd   :  { %p62_p7 = pnand %p61_p6, %p55_p3 }
   0xf   :  { %65 = shalt.err (!%p62_p7)
}
  0x10   :  { %17 = dma.hbm_to_vmem [thread:$0]  %s128_s0, 128, %s15_s7, [#allocation3]  }
  0x11   :  { %88 = dma.done.wait [#allocation3], 128  }
  0x12   :  { %89 = vsyncadd [#allocation3], 4294967168  ;;  %v21_v0 = vld [vmem:[#allocation2] sm:$0xff]  ;;  %s93_s18 = smov [#allocation5]  }
  0x13   :  { %v22_v1 = vsub.f32 0.5, %v21_v0  ;;  %s32_s19 = sshll.u32 %s93_s18, 4  ;;  %s33_s19 = int_to_ptr.vmem [resolvable:$true] %s32_s19 }
  0x14   :  { %s66_s20 = scalar_lea.vmem %s33_s19, 128  ;;  %p71_p9 = scmp.lt.s32.totalorder %s33_s19, %s33_s19 }
  0x15   :  { %v23_v2 = vmul.f32 %v22_v1, %v21_v0  ;;  %p67_p8 = scmp.ne.s32.totalorder %s33_s19, %s66_s20  ;;  %p72_p10 = scmp.lt.s32.totalorder %s66_s20, %s66_s20 }
  0x17   :  { %v41_v3 = vadd.f32 -1.0, %v23_v2  ;;  %p73_p11 = por %p72_p10, %p71_p9 }
  0x19   :  { %25 = vst [vmem:[#allocation5] sm:$0xff] %v41_v3  ;;  %p74_p12 = pnand %p73_p11, %p67_p8 }
  0x1b   :  { %77 = shalt.err (!%p74_p12)
}
  0x1c   :  { %s78_s0 = scalar_lea.hbm %s129_s1, 128 }
  0x1d   :  { %p79_p13 = scmp.ne.s32.totalorder %s129_s1, %s78_s0  ;;  %p82_p0 = scmp.lt.u32.totalorder %s78_s0, %s129_s1 }
  0x1f   :  { %p84_p1 = pnand %p82_p0, %p79_p13 }
  0x21   :  { %87 = shalt.err (!%p84_p1)
}
  0x22   :  { %35 = dma.vmem_to_hbm [thread:$0]  %s33_s19, 128, %s129_s1, [#allocation4]  }
  0x23   :  { %90 = dma.done.wait [#allocation4], 128  }
  0x24   :  { %91 = vsyncadd [#allocation4], 4294967168 }
  0x25   :  { %39 = vsyncpa [#allocation3], 1 }
  0x26   :  { %40 = vsyncpa [#allocation4], 1 }

</bundles_post_ra>
